<compile_context>
chip_gen: v6e
topology: v6e:2x2x1
jax: 0.10.0
libtpu: 0.0.40
codegen_flags: <defaults>
</compile_context>

<pallas_src>
import functools

import jax
import jax.numpy as jnp
from jax.experimental import pallas as pl
from jax.experimental.pallas import tpu as pltpu


def _dice_partial_kernel(logits_ref, labels_ref, out_ref, inter_acc, card_acc, *, hw):
    """Accumulates per-class intersection / cardinality partial sums.

    logits_ref: (C, tile_hw)  (class on sublanes, space on lanes)
    labels_ref: (1, tile_hw)  int32
    out_ref:    (C, 2)        [:,0]=intersection, [:,1]=cardinality (per (b,p))
    """
    s = pl.program_id(2)
    n_inner = pl.num_programs(2)

    @pl.when(s == 0)
    def _():
        inter_acc[...] = jnp.zeros_like(inter_acc)
        card_acc[...] = jnp.zeros_like(card_acc)

    C, tile_hw = logits_ref.shape
    # Unclamped spatial tile index for this (parallel chunk, inner step).
    t = pl.program_id(1) * n_inner + s
    base = t * tile_hw

    lane = jax.lax.broadcasted_iota(jnp.int32, (1, tile_hw), 1)
    valid = (base + lane) < hw                       # (1, tile_hw) ragged-tail mask
    valid_f = valid.astype(jnp.float32)

    x = logits_ref[...].astype(jnp.float32)          # (C, tile_hw)
    x = jnp.where(valid, x, 0.0)                     # kill garbage in the tail

    # softmax along the class (sublane) axis
    m = jnp.max(x, axis=0, keepdims=True)            # (1, tile_hw)
    e = jnp.exp(x - m)
    denom = jnp.sum(e, axis=0, keepdims=True)        # (1, tile_hw)
    r = pl.reciprocal(denom, approx=True)            # EUP vrcp
    r = r * (2.0 - denom * r)                        # one Newton step -> f32 accuracy
    probs = e * (r * valid_f)                        # masked softmax probs

    labels = labels_ref[...]                         # (1, tile_hw) int32
    cls = jax.lax.broadcasted_iota(jnp.int32, (C, tile_hw), 0)
    one_hot = jnp.where(jnp.logical_and(cls == labels, valid), 1.0, 0.0)

    # Pure elementwise VPU accumulation (no per-step cross-lane reduce).
    inter_acc[...] += probs * one_hot
    card_acc[...] += probs + one_hot

    @pl.when(s == n_inner - 1)
    def _():
        out_ref[:, 0:1] = jnp.sum(inter_acc[...], axis=-1, keepdims=True)
        out_ref[:, 1:2] = jnp.sum(card_acc[...], axis=-1, keepdims=True)


def dice_loss_pallas(logits, true, smooth=1e-6, target_block_bytes=1 << 20):
    """logits: [B, C, H, W] float (f32 or bf16); true: [B, H, W] int.

    Returns the scalar dice loss matching the PyTorch DiceLoss.forward.
    """
    B, C, H, W = logits.shape
    HW = H * W
    itemsize = jnp.dtype(logits.dtype).itemsize

    # Lane-dense spatial tile sized for ~target_block_bytes of logits per block.
    target = max(128, (target_block_bytes // (C * itemsize)) // 128 * 128)
    tile_hw = min(target, HW)                 # either a multiple of 128 or the full extent

    n_sp = pl.cdiv(HW, tile_hw)               # spatial tiles per batch element
    n_par = min(2, n_sp)                      # split the streaming reduction for 2 TCs (v7x)
    n_inner = pl.cdiv(n_sp, n_par)

    # Native-NCHW views: free reshapes, no transpose / pad / dtype copy of logits.
    logits3 = logits.reshape(B, C, HW)
    labels3 = true.reshape(B, 1, HW).astype(jnp.int32)

    def _sp_map(b, p, s):
        # Clamp so the DMA never reads past the array; over-range tiles are
        # fully masked out inside the kernel (base >= HW -> zero contribution).
        return (b, 0, jnp.minimum(p * n_inner + s, n_sp - 1))

    kernel = functools.partial(_dice_partial_kernel, hw=HW)

    partials = pl.pallas_call(
        kernel,
        out_shape=jax.ShapeDtypeStruct((B, n_par, C, 2), jnp.float32),
        grid_spec=pltpu.PrefetchScalarGridSpec(
            num_scalar_prefetch=0,
            grid=(B, n_par, n_inner),
            in_specs=[
                pl.BlockSpec((None, C, tile_hw), _sp_map),   # logits (C, tile_hw)
                pl.BlockSpec((None, 1, tile_hw), _sp_map),   # labels (1, tile_hw)
            ],
            out_specs=pl.BlockSpec((None, None, C, 2), lambda b, p, s: (b, p, 0, 0)),
            scratch_shapes=[
                pltpu.VMEM((C, tile_hw), jnp.float32),  # intersection accumulator
                pltpu.VMEM((C, tile_hw), jnp.float32),  # cardinality accumulator
            ],
        ),
        compiler_params=pltpu.CompilerParams(
            dimension_semantics=("parallel", "parallel", "arbitrary"),
            vmem_limit_bytes=48 * 1024 * 1024,  # safe on v5e/v6e/v7x, ample headroom
        ),
    )(logits3, labels3)

    # Tiny epilogue: finish the reduction over (batch, parallel chunk) and the
    # dice / mean — O(C) work, negligible vs. the streaming kernel.
    inter = jnp.sum(partials[..., 0], axis=(0, 1))   # (C,)
    card = jnp.sum(partials[..., 1], axis=(0, 1))    # (C,)
    dice = (2.0 * inter + smooth) / (card + smooth)
    return 1.0 - jnp.mean(dice)


def dice_loss_ref(logits, true, smooth=1e-6):
    """Pure-JAX reference matching the PyTorch module exactly."""
    probs = jax.nn.softmax(logits, axis=1)                       # [B, C, H, W]
    C = probs.shape[1]
    one_hot = jax.nn.one_hot(true, C, dtype=jnp.float32)         # [B, H, W, C]
    one_hot = jnp.transpose(one_hot, (0, 3, 1, 2))               # [B, C, H, W]
    dims = (0, 2, 3)
    intersection = jnp.sum(probs * one_hot, axis=dims)
    cardinality = jnp.sum(probs + one_hot, axis=dims)
    dice = (2.0 * intersection + smooth) / (cardinality + smooth)
    return 1.0 - jnp.mean(dice)


if __name__ == "__main__":
    key = jax.random.PRNGKey(0)

    # Case 1: the module's nominal small shape.
    k1, k2 = jax.random.split(key)
    B, C, H, W = 2, 4, 16, 16
    logits = jax.random.normal(k1, (B, C, H, W), dtype=jnp.float32)
    true = jax.random.randint(k2, (B, H, W), 0, C, dtype=jnp.int32)
    out = jax.block_until_ready(dice_loss_pallas(logits, true))
    ref = jax.block_until_ready(dice_loss_ref(logits, true))
    assert jnp.allclose(out, ref, atol=1e-5, rtol=1e-5), (out, ref)

    # Case 2: ragged spatial extent (H*W not a multiple of 128).
    k3, k4 = jax.random.split(k1)
    logits2 = jax.random.normal(k3, (1, 3, 10, 10), dtype=jnp.float32)
    true2 = jax.random.randint(k4, (1, 10, 10), 0, 3, dtype=jnp.int32)
    out2 = jax.block_until_ready(dice_loss_pallas(logits2, true2))
    ref2 = jax.block_until_ready(dice_loss_ref(logits2, true2))
    assert jnp.allclose(out2, ref2, atol=1e-5, rtol=1e-5), (out2, ref2)

    # Case 3: multiple spatial tiles with an odd tile count (exercises the
    # clamped parallel-split index_map + in-kernel tail masking).
    k5, k6 = jax.random.split(k3)
    logits3 = jax.random.normal(k5, (2, 4, 16, 24), dtype=jnp.float32)
    true3 = jax.random.randint(k6, (2, 16, 24), 0, 4, dtype=jnp.int32)
    out3 = jax.block_until_ready(
        dice_loss_pallas(logits3, true3, target_block_bytes=2048))
    ref3 = jax.block_until_ready(dice_loss_ref(logits3, true3))
    assert jnp.allclose(out3, ref3, atol=1e-5, rtol=1e-5), (out3, ref3)

    print("KERNEL_OK")
</pallas_src>

<mosaic_0001>
module attributes {stable_mosaic.version = 11 : i64} {
  func.func @_dice_partial_kernel(%arg0: i32, %arg1: i32, %arg2: i32, %arg3: memref<1x4x256xf32, #tpu.memory_space<vmem>>, %arg4: memref<1x1x256xi32, #tpu.memory_space<vmem>>, %arg5: memref<1x1x4x2xf32, #tpu.memory_space<vmem>>, %arg6: memref<4x256xf32, #tpu.memory_space<vmem>>, %arg7: memref<4x256xf32, #tpu.memory_space<vmem>>) attributes {dimension_semantics = [#tpu.dimension_semantics<parallel>, #tpu.dimension_semantics<parallel>, #tpu.dimension_semantics<arbitrary>], iteration_bounds = array<i64: 2, 1, 1>, scalar_prefetch = 0 : i64, scratch_operands = 2 : i64, tpu.core_type = #tpu.core_type<tc>, window_params = [{transform_indices = @transform_0, window_bounds = array<i64: 1, 4, 256>}, {transform_indices = @transform_1, window_bounds = array<i64: 1, 1, 256>}, {transform_indices = @transform_2, window_bounds = array<i64: 1, 1, 4, 2>}]} {
    %c0_i32 = arith.constant 0 : i32
    %0 = arith.cmpi eq, %arg2, %c0_i32 : i32
    %1 = arith.extui %0 : i1 to i32
    %c0_i32_0 = arith.constant 0 : i32
    %2 = arith.cmpi ne, %1, %c0_i32_0 : i32
    scf.if %2 {
      %cst_22 = arith.constant 0.000000e+00 : f32
      %55 = vector.broadcast %cst_22 : f32 to vector<4x256xf32>
      %c0_23 = arith.constant 0 : index
      %c0_24 = arith.constant 0 : index
      %56 = vector.load %arg6[%c0_23, %c0_24] : memref<4x256xf32, #tpu.memory_space<vmem>>, vector<4x256xf32>
      tpu.vector_store %arg6[%c0_23, %c0_24], %55 {strides = array<i32>} : memref<4x256xf32, #tpu.memory_space<vmem>>, vector<4x256xf32>,
      %cst_25 = arith.constant 0.000000e+00 : f32
      %57 = vector.broadcast %cst_25 : f32 to vector<4x256xf32>
      %c0_26 = arith.constant 0 : index
      %c0_27 = arith.constant 0 : index
      %58 = vector.load %arg7[%c0_26, %c0_27] : memref<4x256xf32, #tpu.memory_space<vmem>>, vector<4x256xf32>
      tpu.vector_store %arg7[%c0_26, %c0_27], %57 {strides = array<i32>} : memref<4x256xf32, #tpu.memory_space<vmem>>, vector<4x256xf32>,
    } else {
    }
    %c1_i32 = arith.constant 1 : i32
    %3 = arith.muli %arg1, %c1_i32 : i32
    %4 = arith.addi %3, %arg2 : i32
    %c256_i32 = arith.constant 256 : i32
    %5 = arith.muli %4, %c256_i32 : i32
    %6 = tpu.iota {dimensions = array<i32: 1>} : vector<1x256xi32>
    %7 = vector.broadcast %5 : i32 to vector<1x256xi32>
    %8 = arith.addi %7, %6 : vector<1x256xi32>
    %c256_i32_1 = arith.constant 256 : i32
    %9 = vector.broadcast %c256_i32_1 : i32 to vector<1x256xi32>
    %10 = arith.cmpi slt, %8, %9 : vector<1x256xi32>
    %11 = arith.extui %10 : vector<1x256xi1> to vector<1x256xi32>
    %12 = arith.sitofp %11 : vector<1x256xi32> to vector<1x256xf32>
    %c0 = arith.constant 0 : index
    %c0_2 = arith.constant 0 : index
    %c0_3 = arith.constant 0 : index
    %13 = vector.load %arg3[%c0, %c0_2, %c0_3] : memref<1x4x256xf32, #tpu.memory_space<vmem>>, vector<1x4x256xf32>
    %14 = vector.shape_cast %13 : vector<1x4x256xf32> to vector<4x256xf32>
    %cst = arith.constant 0.000000e+00 : f32
    %15 = vector.shape_cast %10 : vector<1x256xi1> to vector<1x256xi1>
    %16 = vector.broadcast %15 : vector<1x256xi1> to vector<4x256xi1>
    %17 = vector.broadcast %cst : f32 to vector<4x256xf32>
    %18 = arith.select %16, %14, %17 : vector<4x256xi1>, vector<4x256xf32>
    %cst_4 = arith.constant dense<0xFF800000> : vector<256xf32>
    %19 = vector.multi_reduction <maximumf>, %18, %cst_4 [0] : vector<4x256xf32> to vector<256xf32>
    %20 = vector.shape_cast %19 : vector<256xf32> to vector<1x256xf32>
    %21 = vector.broadcast %20 : vector<1x256xf32> to vector<4x256xf32>
    %22 = arith.subf %18, %21 : vector<4x256xf32>
    %23 = math.exp %22 : vector<4x256xf32>
    %cst_5 = arith.constant dense<0.000000e+00> : vector<256xf32>
    %24 = vector.multi_reduction <add>, %23, %cst_5 [0] : vector<4x256xf32> to vector<256xf32>
    %25 = vector.shape_cast %24 : vector<256xf32> to vector<1x256xf32>
    %26 = tpu.reciprocal %25 {approx = true} : vector<1x256xf32> -> vector<1x256xf32>
    %27 = arith.mulf %25, %26 : vector<1x256xf32>
    %cst_6 = arith.constant 2.000000e+00 : f32
    %28 = vector.broadcast %cst_6 : f32 to vector<1x256xf32>
    %29 = arith.subf %28, %27 : vector<1x256xf32>
    %30 = arith.mulf %26, %29 : vector<1x256xf32>
    %31 = arith.mulf %30, %12 : vector<1x256xf32>
    %32 = vector.broadcast %31 : vector<1x256xf32> to vector<4x256xf32>
    %33 = arith.mulf %23, %32 : vector<4x256xf32>
    %c0_7 = arith.constant 0 : index
    %c0_8 = arith.constant 0 : index
    %c0_9 = arith.constant 0 : index
    %34 = vector.load %arg4[%c0_7, %c0_8, %c0_9] : memref<1x1x256xi32, #tpu.memory_space<vmem>>, vector<1x1x256xi32>
    %35 = vector.shape_cast %34 : vector<1x1x256xi32> to vector<1x256xi32>
    %36 = tpu.iota {dimensions = array<i32: 0>} : vector<4x256xi32>
    %37 = vector.broadcast %35 : vector<1x256xi32> to vector<4x256xi32>
    %38 = arith.cmpi eq, %36, %37 : vector<4x256xi32>
    %39 = vector.broadcast %10 : vector<1x256xi1> to vector<4x256xi1>
    %40 = arith.andi %38, %39 : vector<4x256xi1>
    %cst_10 = arith.constant 1.000000e+00 : f32
    %cst_11 = arith.constant 0.000000e+00 : f32
    %41 = vector.broadcast %cst_10 : f32 to vector<4x256xf32>
    %42 = vector.broadcast %cst_11 : f32 to vector<4x256xf32>
    %43 = arith.select %40, %41, %42 : vector<4x256xi1>, vector<4x256xf32>
    %c0_12 = arith.constant 0 : index
    %c0_13 = arith.constant 0 : index
    %44 = vector.load %arg6[%c0_12, %c0_13] : memref<4x256xf32, #tpu.memory_space<vmem>>, vector<4x256xf32>
    %45 = arith.mulf %33, %43 : vector<4x256xf32>
    %46 = arith.addf %44, %45 : vector<4x256xf32>
    %c0_14 = arith.constant 0 : index
    %c0_15 = arith.constant 0 : index
    %47 = vector.load %arg6[%c0_14, %c0_15] : memref<4x256xf32, #tpu.memory_space<vmem>>, vector<4x256xf32>
    tpu.vector_store %arg6[%c0_14, %c0_15], %46 {strides = array<i32>} : memref<4x256xf32, #tpu.memory_space<vmem>>, vector<4x256xf32>,
    %c0_16 = arith.constant 0 : index
    %c0_17 = arith.constant 0 : index
    %48 = vector.load %arg7[%c0_16, %c0_17] : memref<4x256xf32, #tpu.memory_space<vmem>>, vector<4x256xf32>
    %49 = arith.addf %33, %43 : vector<4x256xf32>
    %50 = arith.addf %48, %49 : vector<4x256xf32>
    %c0_18 = arith.constant 0 : index
    %c0_19 = arith.constant 0 : index
    %51 = vector.load %arg7[%c0_18, %c0_19] : memref<4x256xf32, #tpu.memory_space<vmem>>, vector<4x256xf32>
    tpu.vector_store %arg7[%c0_18, %c0_19], %50 {strides = array<i32>} : memref<4x256xf32, #tpu.memory_space<vmem>>, vector<4x256xf32>,
    %c0_i32_20 = arith.constant 0 : i32
    %52 = arith.cmpi eq, %arg2, %c0_i32_20 : i32
    %53 = arith.extui %52 : i1 to i32
    %c0_i32_21 = arith.constant 0 : i32
    %54 = arith.cmpi ne, %53, %c0_i32_21 : i32
    scf.if %54 {
      %c0_22 = arith.constant 0 : index
      %c0_23 = arith.constant 0 : index
      %55 = vector.load %arg6[%c0_22, %c0_23] : memref<4x256xf32, #tpu.memory_space<vmem>>, vector<4x256xf32>
      %cst_24 = arith.constant dense<0.000000e+00> : vector<4xf32>
      %56 = vector.multi_reduction <add>, %55, %cst_24 [1] : vector<4x256xf32> to vector<4xf32>
      %57 = vector.shape_cast %56 : vector<4xf32> to vector<4x1xf32>
      %c0_25 = arith.constant 0 : index
      %c0_26 = arith.constant 0 : index
      %c0_27 = arith.constant 0 : index
      %c0_28 = arith.constant 0 : index
      %58 = vector.load %arg5[%c0_25, %c0_26, %c0_27, %c0_28] : memref<1x1x4x2xf32, #tpu.memory_space<vmem>>, vector<1x1x4x1xf32>
      %59 = vector.shape_cast %58 : vector<1x1x4x1xf32> to vector<4x1xf32>
      %60 = vector.shape_cast %57 : vector<4x1xf32> to vector<1x1x4x1xf32>
      tpu.vector_store %arg5[%c0_25, %c0_26, %c0_27, %c0_28], %60 {strides = array<i32>} : memref<1x1x4x2xf32, #tpu.memory_space<vmem>>, vector<1x1x4x1xf32>,
      %c0_29 = arith.constant 0 : index
      %c0_30 = arith.constant 0 : index
      %61 = vector.load %arg7[%c0_29, %c0_30] : memref<4x256xf32, #tpu.memory_space<vmem>>, vector<4x256xf32>
      %cst_31 = arith.constant dense<0.000000e+00> : vector<4xf32>
      %62 = vector.multi_reduction <add>, %61, %cst_31 [1] : vector<4x256xf32> to vector<4xf32>
      %63 = vector.shape_cast %62 : vector<4xf32> to vector<4x1xf32>
      %c0_32 = arith.constant 0 : index
      %c0_33 = arith.constant 0 : index
      %c0_34 = arith.constant 0 : index
      %c1 = arith.constant 1 : index
      %64 = vector.load %arg5[%c0_32, %c0_33, %c0_34, %c1] : memref<1x1x4x2xf32, #tpu.memory_space<vmem>>, vector<1x1x4x1xf32>
      %65 = vector.shape_cast %64 : vector<1x1x4x1xf32> to vector<4x1xf32>
      %66 = vector.shape_cast %63 : vector<4x1xf32> to vector<1x1x4x1xf32>
      tpu.vector_store %arg5[%c0_32, %c0_33, %c0_34, %c1], %66 {strides = array<i32>} : memref<1x1x4x2xf32, #tpu.memory_space<vmem>>, vector<1x1x4x1xf32>,
    } else {
    }
    return
  }
  func.func @transform_0(%arg0: i32, %arg1: i32, %arg2: i32) -> (i32, i32, i32) {
    %c1_i32 = arith.constant 1 : i32
    %0 = arith.muli %arg1, %c1_i32 : i32
    %1 = arith.addi %0, %arg2 : i32
    %c0_i32 = arith.constant 0 : i32
    %2 = arith.minsi %1, %c0_i32 : i32
    %c0_i32_0 = arith.constant 0 : i32
    %c0_i32_1 = arith.constant 0 : i32
    return %arg0, %c0_i32_0, %2 : i32, i32, i32
  }
  func.func @transform_1(%arg0: i32, %arg1: i32, %arg2: i32) -> (i32, i32, i32) {
    %c1_i32 = arith.constant 1 : i32
    %0 = arith.muli %arg1, %c1_i32 : i32
    %1 = arith.addi %0, %arg2 : i32
    %c0_i32 = arith.constant 0 : i32
    %2 = arith.minsi %1, %c0_i32 : i32
    %c0_i32_0 = arith.constant 0 : i32
    %c0_i32_1 = arith.constant 0 : i32
    return %arg0, %c0_i32_0, %2 : i32, i32, i32
  }
  func.func @transform_2(%arg0: i32, %arg1: i32, %arg2: i32) -> (i32, i32, i32, i32) {
    %c0_i32 = arith.constant 0 : i32
    %c0_i32_0 = arith.constant 0 : i32
    %c0_i32_1 = arith.constant 0 : i32
    return %arg0, %arg1, %c0_i32, %c0_i32_0 : i32, i32, i32, i32
  }
}

</mosaic_0001>

<bundles_post_ra>
// kernel: tpu_custom_call.1
= control target key start
LH: loop header
LB: loop body
LE: loop exit
PB: predicated region body
PF: predicated region fallthrough
CT: control target
= control target key end

     0   :  { %7 = vsyncpa [#allocation5], 0  ;;  %s868_s0 = inlined_call_operand.hbm [shape: f32[2,4,256], index: 0, kind: input, shape index: {}]   ;;  %s869_s1 = inlined_call_operand.hbm [shape: s32[2,1,256], index: 1, kind: input, shape index: {}]   ;;  %s870_s2 = inlined_call_operand.vmem [shape: f32[2,1,4,2], index: 2, kind: output, shape index: {}]  }
   0x1   :  { %9 = vsyncpa [#allocation5 + $0x1], 0 }
   0x2   :  { %10 = vsyncpa [#allocation7], 0 }
   0x3   :  { %12 = vsyncpa [#allocation7 + $0x1], 0  ;;  %s729_s9 = smov 0   ;;  %s731_s10 = smov 0  }
   0x4   :  { %s733_s11 = smov 0   ;;  %s735_s12 = smov 0  }
   0x5   :  { %s737_s13 = smov 0   ;;  %s739_s14 = smov 0  }
   0x6 LB: > { %s509_s15 = sadd.s32 4294967295, %s709_s14   ;;  %s37_s16 = sadd.s32 1, %s705_s13  ;;  %s709_s14 = sphi %s739_s14, %s18_s14   ;;  %s705_s13 = sphi %s737_s13, %s879_s13   ;;  %s701_s12 = sphi %s735_s12, %s878_s12   ;;  %s697_s11 = sphi %s733_s11, %s877_s11   ;;  %s693_s10 = sphi %s731_s10, %s876_s10   ;;  %s689_s9 = sphi %s729_s9, %s875_s9  }
   0x7   : > { %p39_p0 = scmp.ge.s32.totalorder %s37_s16, 2  ;;  %s52_s17 = sadd.s32 1, %s697_s11 }
   0x8   : > { %p59_p1 = scmp.ne.s32.totalorder %s697_s11, %s693_s10  ;;  %p60_p2 = scmp.eq.s32.totalorder %s709_s14, 0 }
   0x9   : > { %s881_s16 = smov (%p39_p0, %s37_s16), 0  ;;  %p65_p4 = scmp.ne.s32.totalorder %s693_s10, %s689_s9 }
   0xa   : > { %p765_p3 = por %p60_p2, %p59_p1  ;;  %s47_s19 = ssub.s32 %s705_s13, %s881_s16 }
   0xb   : > { %p66_p5 = scmp.eq.s32.totalorder %s509_s15, 0  ;;  %p50_p6 = scmp.eq.s32.totalorder %s47_s19, 0 }
   0xc   : > { %p540_p8 = scmp.lt.s32.totalorder %s709_s14, 2  ;;  %s781_s22 = sand.u32 1, %s697_s11  }
   0xd   : > { %p772_p7 = por %p66_p5, %p65_p4  ;;  %s525_s23 = sshll.u32 %s705_s13, 7 }
   0xe   : > { %s778_s21 = scalar_select %p50_p6, %s697_s11, %s52_s17  }
   0xf   : > { %s513_s24 = sshll.u32 %s781_s22, 3  ;;  %s166_s27 = scalar_lea.hbm %s868_s0, %s525_s23 }
  0x10   : > { %s155_s28 = scalar_lea.vmem [#allocation4], %s513_s24  ;;  %p790_p9 = pnand %p540_p8, %p765_p3 }
  0x11   : > { %s168_s29 = sshll.u32 %s155_s28, 4  ;;  %p519_p10 = scmp.ge.s32.totalorder %s709_s14, 1  ;;  %s169_s29 = int_to_ptr.vmem [resolvable:$true] %s168_s29 }
  0x12   : > { %p197_p11 = scmp.lt.s32.totalorder %s709_s14, 3  ;;  %s152_s3 = scalar_lea.sflag [#allocation5], %s781_s22 }
  0x13   : > { %p601_p12 = pneg %p790_p9  ;;  %s612_s4 = scalar_lea.vmem %s169_s29, 128 }
  0x14   : > { %p613_p13 = scmp.ne.s32.totalorder %s169_s29, %s612_s4  ;;  %s711_s5 = smov [#allocation4]  }
  0x15   : > { %s617_s6 = sshll.u32 %s711_s5, 4  ;;  %s618_s6 = int_to_ptr.vmem [resolvable:$false] %s617_s6 }
  0x16   : > { %p615_p0 = pnand %p613_p13, %p601_p12  ;;  %s619_s7 = scalar_lea.vmem %s618_s6, 256 }
  0x17   : > { %p620_p2 = scmp.lt.s32.totalorder %s169_s29, %s618_s6  ;;  %p621_p3 = scmp.lt.s32.totalorder %s619_s7, %s612_s4 }
  0x18   : > { %p616_p1 = pneg %p615_p0 }
  0x19   : > { %p622_p4 = por %p621_p3, %p620_p2 }
  0x1b   : > { %p623_p5 = pnand %p622_p4, %p616_p1 }
  0x1d   : > { %626 = shalt.err (!%p623_p5)
}
  0x1e   : > { %536 = dma.hbm_to_vmem [thread:$0]  (!%p790_p9), %s166_s27, 128, %s169_s29, %s152_s3  }
  0x1f   : > { %p808_p6 = pnand %p519_p10, %p197_p11  ;;  %s516_s9 = sshll.u32 %s781_s22, 1 }
  0x20   : > { %s526_s15 = sshll.u32 %s705_s13, 5  ;;  %s179_s23 = scalar_lea.vmem [#allocation6], %s516_s9 }
  0x21   : > { %s190_s19 = scalar_lea.hbm %s869_s1, %s526_s15  ;;  %s192_s24 = sshll.u32 %s179_s23, 4  ;;  %s193_s24 = int_to_ptr.vmem [resolvable:$true] %s192_s24 }
  0x22   : > { %s176_s25 = scalar_lea.sflag [#allocation7], %s781_s22  ;;  %s640_s26 = scalar_lea.vmem %s193_s24, 32 }
  0x23   : > { %p641_p8 = scmp.ne.s32.totalorder %s193_s24, %s640_s26  ;;  %s712_s27 = smov [#allocation6]  }
  0x24   : > { %s645_s28 = sshll.u32 %s712_s27, 4  ;;  %s646_s28 = int_to_ptr.vmem [resolvable:$false] %s645_s28 }
  0x25   : > { %p643_p13 = pnand %p641_p8, %p601_p12  ;;  %s647_s29 = scalar_lea.vmem %s646_s28, 64 }
  0x26   : > { %p648_p10 = scmp.lt.s32.totalorder %s193_s24, %s646_s28  ;;  %p649_p11 = scmp.lt.s32.totalorder %s647_s29, %s640_s26 }
  0x27   : > { %p644_p0 = pneg %p643_p13 }
  0x28   : > { %p650_p1 = por %p649_p11, %p648_p10 }
  0x2a   : > { %p651_p2 = pnand %p650_p1, %p644_p0 }
  0x2c   : > { %654 = shalt.err (!%p651_p2)
}
  0x2d   : > { %539 = dma.hbm_to_vmem [thread:$0]  (!%p790_p9), %s190_s19, 32, %s193_s24, %s176_s25  }
  0x2e   : > { %201 = sbr.rel (%p808_p6) target bundleno = 274 (0x112), region = 28  ;;  %s203_s22 = sand.u32 (!%p808_p6), 1, %s693_s10  }
  0x2f   : > { %s520_s3 = sshll.u32 (!%p808_p6), %s203_s22, 3  ;;  %s204_s4 = scalar_lea.sflag (!%p808_p6), [#allocation5], %s203_s22 }
  0x30   : > { %s207_s5 = scalar_lea.vmem (!%p808_p6), [#allocation4], %s520_s3 }
  0x33   : > { %680 = dma.done.wait (%p772_p7), %s204_s4, 128  }
  0x34   : > { %682 = vsyncadd (%p772_p7), %s204_s4, 4294967168  ;;  %s521_s6 = sshll.u32 %s203_s22, 1  ;;  %s213_s7 = scalar_lea.sflag [#allocation7], %s203_s22 }
  0x35   : > { %s830_s9 = scalar_lea.vmem [#allocation6], %s521_s6 }
  0x36   : > { %684 = dma.done.wait (%p772_p7), %s213_s7, 32  }
  0x37   : > { %686 = vsyncadd (%p772_p7), %s213_s7, 4294967264  ;;  %vm287_vm0 = vcmask 1043456   ;;  %v279_v0 = vld [vmem:[%s207_s5] sm:$0xff]  ;;  %v335_v36 = vlaneseq  ;;  %v334_v39 = vld [vmem:[%s830_s9] sm:$0x3]  ;;  %v713_v50 = vmov 0.0  }
  0x38   : > { %v283_v1 = vcombine.high %v279_v0, %v279_v0  ;;  %v288_v2 = vsel %vm287_vm0, %v279_v0, -inf  ;;  %p252_p7 = scmp.lt.s32.totalorder %s701_s12, 1  ;;  %vm381_vm3 = vcmask 3072   ;;  %vm392_vm4 = vcmask 11272  }
  0x39   : > { %v289_v3 = vrot.slane %v288_v2, 4  ;;  %v336_v37 = vshrl.u32 %v335_v36, 7 }
  0x3a   : > { %v295_v4 = vsel %vm287_vm0, %v283_v1, -inf  ;;  %s883_s12 = smov (!%p252_p7, %s701_s12), 1 }
  0x3b   : > { %v290_v5 = vmax.f32 %v288_v2, %v289_v3  ;;  %v296_v6 = vrot.slane %v295_v4, 4  ;;  %v339_v38 = vsub.s32 0, %v336_v37  ;;  %v343_v40 = vsub.s32 1, %v336_v37  ;;  %s522_s20 = sshll.u32 %s883_s12, 2 }
  0x3c   : > { %s258_s15 = scalar_lea.vmem %s870_s2, %s522_s20 }
  0x3d   : > { %v291_v7 = vrot.slane %v290_v5, 2  ;;  %v297_v8 = vmax.f32 %v295_v4, %v296_v6  ;;  %v340_v41 = vrot.slane %v334_v39, %v339_v38  ;;  %v344_v44 = vrot.slane %v334_v39, %v343_v40 }
  0x3f   : > { %v292_v9 = vmax.f32 %v290_v5, %v291_v7  ;;  %v298_v10 = vrot.slane %v297_v8, 2  ;;  %vm345_vm1 = vcmp.eq.s32.totalorder %v336_v37, %v340_v41  ;;  %vm346_vm2 = vcmp.eq.s32.totalorder %v336_v37, %v344_v44 }
  0x40   : > { %v349_v51 = vsel %vm345_vm1, 1.0, %v713_v50  ;;  %v350_v54 = vsel %vm346_vm2, 1.0, %v713_v50 }
  0x41   : > { %v293_v11 = vrot.slane %v292_v9, 1  ;;  %v299_v12 = vmax.f32 %v297_v8, %v298_v10 }
  0x43   : > { %v294_v13 = vmax.f32 %v292_v9, %v293_v11  ;;  %v300_v14 = vrot.slane %v299_v12, 1 }
  0x45   : > { %v301_v15 = vmax.f32 %v299_v12, %v300_v14  ;;  %v302_v16 = vsub.f32 %v279_v0, %v294_v13 }
  0x47   : > { %v303_v17 = vsub.f32 %v283_v1, %v301_v15  ;;  %v304_v18 = vmul.f32 1.442695, %v302_v16 }
  0x49   : > { %591 = vpow2.f32 %v304_v18  ;;  %v306_v19 = vmul.f32 1.442695, %v303_v17 }
  0x4b   : > { %593 = vpow2.f32 %v306_v19 }
  0x56   : > { %v592_v20 = vpop.eup %591 }
  0x57   : > { %v308_v21 = vsel %vm287_vm0, %v592_v20, 0.0 }
  0x58   : > { %v594_v22 = vpop.eup %593  ;;  %v309_v23 = vrot.slane %v308_v21, 4 }
  0x59   : > { %v315_v24 = vsel %vm287_vm0, %v594_v22, 0.0 }
  0x5a   : > { %v310_v25 = vadd.f32 %v309_v23, %v308_v21  ;;  %v316_v26 = vrot.slane %v315_v24, 4 }
  0x5c   : > { %v311_v27 = vrot.slane %v310_v25, 2  ;;  %v317_v28 = vadd.f32 %v316_v26, %v315_v24 }
  0x5e   : > { %v312_v29 = vadd.f32 %v311_v27, %v310_v25  ;;  %v318_v30 = vrot.slane %v317_v28, 2 }
  0x60   : > { %v313_v31 = vrot.slane %v312_v29, 1  ;;  %v319_v32 = vadd.f32 %v318_v30, %v317_v28 }
  0x62   : > { %v314_v33 = vadd.f32 %v313_v31, %v312_v29  ;;  %v320_v34 = vrot.slane %v319_v32, 1 }
  0x64   : > { %v321_v35 = vadd.f32 %v320_v34, %v319_v32  ;;  %595 = vrcp.f32 %v314_v33 }
  0x66   : > { %597 = vrcp.f32 %v321_v35 }
  0x71   : > { %v596_v42 = vpop.eup %595 }
  0x72   : > { %v324_v43 = vmul.f32 %v596_v42, %v314_v33 }
  0x73   : > { %v598_v45 = vpop.eup %597 }
  0x74   : > { %v325_v46 = vmul.f32 %v598_v45, %v321_v35  ;;  %v326_v47 = vsub.f32 2.0, %v324_v43 }
  0x76   : > { %v327_v48 = vsub.f32 2.0, %v325_v46  ;;  %v328_v49 = vmul.f32 %v596_v42, %v326_v47 }
  0x78   : > { %v329_v52 = vmul.f32 %v598_v45, %v327_v48  ;;  %v332_v53 = vmul.f32 %v592_v20, %v328_v49 }
  0x7a   : > { %v333_v55 = vmul.f32 %v594_v22, %v329_v52  ;;  %v352_v56 = vmul.f32 %v349_v51, %v332_v53  ;;  %v361_v57 = vadd.f32 %v349_v51, %v332_v53 }
  0x7c   : > { %v353_v58 = vmul.f32 %v350_v54, %v333_v55  ;;  %v362_v59 = vadd.f32 %v350_v54, %v333_v55 }
  0x7e   : > { %v356_v60 = vcombine.low %v352_v56, %v353_v58  ;;  %v527_v61 = vcombine.low %v353_v58, %v353_v58  ;;  %v365_v62 = vcombine.low %v361_v57, %v362_v59  ;;  %v528_v63 = vcombine.low %v362_v59, %v362_v59 }
  0x80   : > { %v376_v0 = vsel %vm287_vm0, %v356_v60, 0.0  ;;  %v377_v1 = vsel %vm287_vm0, %v527_v61, 0.0  ;;  %v387_v2 = vsel %vm287_vm0, %v365_v62, 0.0  ;;  %v388_v3 = vsel %vm287_vm0, %v528_v63, 0.0 }
  0x81   : > { %v378_v4 = vadd.f32 %v377_v1, %v376_v0  ;;  %v389_v5 = vadd.f32 %v388_v3, %v387_v2 }
  0x83   : > { %379 = vadd.xlane.f32.xlu0 %v378_v4 }
  0x87   : > { %390 = vadd.xlane.f32.xlu0 %v389_v5 }
 0x10c   : > { %v380_v6 = vpop.xlane.xlu0 %379 }
 0x10d   : > { %382 = vst.msk [vmem:[%s258_s15] sm:$0xf] %vm381_vm3, %v380_v6 }
 0x110   : > { %v391_v7 = vpop.xlane.xlu0 %390 }
 0x111   : > { %393 = vst.msk [vmem:[%s258_s15] sm:$0xf] %vm392_vm4, %v391_v7 }
 0x112 PF: > { %s18_s14 = sadd.s32 1, %s709_s14   ;;  %s875_s9 = smov %s693_s10 }
 0x113   : > { %p15_p9 = scmp.ge.s32.totalorder %s18_s14, 4   ;;  %s876_s10 = smov %s697_s11 }
 0x114   : > { %s877_s11 = smov %s778_s21  ;;  %s878_s12 = smov %s705_s13 }
 0x115   : > { %s879_s13 = smov %s881_s16  ;;  %17 = sbr.rel (!%p15_p9) target bundleno = 6 (0x6), region = 89 }
 0x11a   :  { %419 = vsyncpa [#allocation5], 1 }
 0x11b   :  { %421 = vsyncpa [#allocation5 + $0x1], 1 }
 0x11c   :  { %422 = vsyncpa [#allocation7], 1 }
 0x11d   :  { %424 = vsyncpa [#allocation7 + $0x1], 1 }

</bundles_post_ra>
